<compile_context>
chip_gen: v5e
topology: v5e:2x2
jax: 0.10.0
libtpu: 0.0.40
codegen_flags: <defaults>
</compile_context>

<pallas_src>
import functools

import jax
import jax.numpy as jnp
from jax.experimental import pallas as pl
from jax.experimental.pallas import tpu as pltpu

_MIB = 1024 * 1024


def _round_up(x, m):
    return ((x + m - 1) // m) * m


def _usable_vmem_bytes():
    """Per-TensorCore VMEM we allow the kernel to request (with headroom)."""
    try:
        cap = int(getattr(pltpu.get_tpu_info(), "vmem_capacity_bytes",
                          64 * _MIB))
    except Exception:            # info unavailable -> assume worst case (v7x)
        cap = 64 * _MIB
    # ~15% headroom for compiler-internal scratch / spills:
    #   v7x (64 MiB)  -> ~54 MiB usable
    #   v5e/v6e (128) -> ~108 MiB usable
    return max(int(cap * 0.85), 32 * _MIB)


def _per_step_vmem(tm, th, D, O_pad, w_isz, x_isz, out_isz):
    """Worst-case per-grid-step VMEM footprint (double-buffered tiles)."""
    w_tiles = 2 * (D * 2 * th + th * O_pad) * w_isz   # [W1|W2] / W3 tiles
    biases = 2 * (2 * th + O_pad) * 4                 # [b1|b2] / b3 (f32)
    x_tiles = 2 * tm * D * x_isz
    o_tiles = 2 * tm * O_pad * out_isz
    acc = tm * O_pad * 4                              # f32 accumulator
    tmps = 6 * tm * th * 4                            # x12/x1/x2/h f32 temps
    return w_tiles + biases + x_tiles + o_tiles + acc + tmps


def _pick_tm(M, tm_req, sub):
    """Row tile: multiple of the sublane pack, >= 2 row tiles whenever M
    allows it (v7x megacore), modest padding waste."""
    cap = max(_round_up((M + 1) // 2, sub), sub)   # forces >= 2 tiles if possible
    limit = max(min(tm_req, cap), sub)
    cands = [c for c in (512, 256, 128, 64, 32, 16, 8)
             if c % sub == 0 and c <= limit]
    if not cands:
        return sub
    for c in cands:                                 # descending size
        if _round_up(M, c) - M <= max(c // 2, M // 4):
            return c
    return cands[-1]


def _swiglu_kernel(x_ref, w12_ref, b12_ref, w3_ref, b3_ref, o_ref, acc_ref,
                   *, th):
    """One (row-tile i, hidden-tile k) grid step.  grid = (M_pad/tm, H/th).

      x12 = x @ [W1|W2] + [b1|b2]     (single wide MXU pass, packed weights)
      h   = silu(x12[:, :th]) * x12[:, th:]
      acc += h @ W3                    (hidden axis = trailing reduction axis)
    """
    k = pl.program_id(1)

    @pl.when(k == 0)
    def _():
        # Fold the output bias into the accumulator init (free under pl.when).
        acc_ref[...] = jnp.broadcast_to(
            b3_ref[...].astype(jnp.float32), acc_ref.shape)

    x12 = jnp.dot(x_ref[...], w12_ref[...],
                  preferred_element_type=jnp.float32) + b12_ref[...]
    x1 = x12[:, :th]
    x2 = x12[:, th:]
    h = (x1 * jax.nn.sigmoid(x1)) * x2                      # SiLU gate, f32
    acc_ref[...] += jnp.dot(h.astype(w3_ref.dtype), w3_ref[...],
                            preferred_element_type=jnp.float32)

    @pl.when(k == pl.num_programs(1) - 1)
    def _():
        o_ref[...] = acc_ref[...].astype(o_ref.dtype)


def swiglu_mlp(x, w1, b1, w2, b2, w3, b3, *, tm=256, th=512,
               compute_dtype=None):
    """SwiGLU MLP forward: silu(x@W1+b1) * (x@W2+b2) @ W3 + b3.

    x: (B, S, D).  Weights pre-transposed: w1, w2: (D, H); w3: (H, O).
    Biases: (H,)/(1,H) and (O,)/(1,O).
    compute_dtype (e.g. jnp.bfloat16) casts the MXU operands only;
    accumulation, SiLU and biases stay f32.
    """
    B, S, D = x.shape
    H = w1.shape[1]
    O = w3.shape[1]
    M = B * S
    out_dtype = x.dtype

    b1 = b1.reshape(1, H).astype(jnp.float32)
    b2 = b2.reshape(1, H).astype(jnp.float32)
    b3 = b3.reshape(1, O).astype(jnp.float32)

    if compute_dtype is not None:
        x = x.astype(compute_dtype)
        w1 = w1.astype(compute_dtype)
        w2 = w2.astype(compute_dtype)
        w3 = w3.astype(compute_dtype)

    x_isz = jnp.dtype(x.dtype).itemsize
    w_isz = jnp.dtype(w1.dtype).itemsize
    out_isz = jnp.dtype(out_dtype).itemsize
    sub = {4: 8, 2: 16, 1: 32}.get(x_isz, 8)   # sublane pack of compute dtype

    # ---- lane-dense output: pad num_classes to a multiple of 128 lanes.
    # (256 would fill the v6e/v7x MXU better, but doubles dead work for a
    #  typically-small classifier head, so stay at 128.)
    O_pad = _round_up(O, 128)
    if O_pad != O:
        w3 = jnp.pad(w3, ((0, 0), (0, O_pad - O)))
        b3 = jnp.pad(b3, ((0, 0), (0, O_pad - O)))

    # ---- row tiling (parallel axis).
    tm_eff = _pick_tm(M, tm, sub)
    M_pad = _round_up(M, tm_eff)
    x2d = x.reshape(M, D)
    if M_pad != M:
        x2d = jnp.pad(x2d, ((0, M_pad - M), (0, 0)))

    # ---- hidden (reduction) tiling.  Prefer fully resident weights (th = H):
    # the weight index maps are then grid-invariant and W1/W2/W3 are DMA'd
    # from HBM exactly once instead of once per row tile.  The budget check
    # charges the pipeline's double buffer, so we don't need
    # pipeline_mode=pl.Buffered(1) (left out for lowering portability).
    usable = _usable_vmem_bytes()

    def fits(th_c):
        return _per_step_vmem(tm_eff, th_c, D, O_pad,
                              w_isz, x_isz, out_isz) <= usable

    if fits(H):
        th_eff = H
    else:
        cands = [c for c in (2048, 1024, 512, 256, 128)
                 if c <= min(th, H) and H % c == 0]
        if cands:
            th_eff = next((c for c in cands if fits(c)), cands[-1])
        else:
            th_eff = H          # no clean tiling of H; keep a single full tile

    nh = H // th_eff
    grid = (M_pad // tm_eff, nh)

    # ---- pack [W1|W2] (and [b1|b2]) per hidden tile -> one wide MXU pass.
    w12 = jnp.concatenate(
        [w1.reshape(D, nh, th_eff), w2.reshape(D, nh, th_eff)], axis=2
    ).reshape(D, 2 * H)
    b12 = jnp.concatenate(
        [b1.reshape(1, nh, th_eff), b2.reshape(1, nh, th_eff)], axis=2
    ).reshape(1, 2 * H)

    # ---- VMEM ask: actual footprint + margin, never above the usable cap.
    needed = _per_step_vmem(tm_eff, th_eff, D, O_pad, w_isz, x_isz, out_isz)
    vmem_limit = int(min(max(int(needed * 1.25), 32 * _MIB), usable))

    # ---- advisory cost (weights re-streamed per row tile iff th_eff < H).
    weight_reads = 1 if nh == 1 else grid[0]
    cost = pl.CostEstimate(
        flops=int(2 * M_pad * (2 * D * H + H * O_pad)),
        transcendentals=int(M_pad * H),
        bytes_accessed=int(
            x2d.size * x_isz
            + weight_reads * ((w12.size + w3.size) * w_isz
                              + (b12.size + b3.size) * 4)
            + M_pad * O_pad * out_isz),
    )

    out = pl.pallas_call(
        functools.partial(_swiglu_kernel, th=th_eff),
        out_shape=jax.ShapeDtypeStruct((M_pad, O_pad), out_dtype),
        grid_spec=pltpu.PrefetchScalarGridSpec(
            num_scalar_prefetch=0,
            grid=grid,
            in_specs=[
                pl.BlockSpec((tm_eff, D), lambda i, k: (i, 0)),       # x rows
                pl.BlockSpec((D, 2 * th_eff), lambda i, k: (0, k)),   # [W1|W2]
                pl.BlockSpec((1, 2 * th_eff), lambda i, k: (0, k)),   # [b1|b2]
                pl.BlockSpec((th_eff, O_pad), lambda i, k: (k, 0)),   # W3
                pl.BlockSpec((1, O_pad), lambda i, k: (0, 0)),        # b3
            ],
            out_specs=pl.BlockSpec((tm_eff, O_pad), lambda i, k: (i, 0)),
            scratch_shapes=[pltpu.VMEM((tm_eff, O_pad), jnp.float32)],
        ),
        compiler_params=pltpu.CompilerParams(
            dimension_semantics=("parallel", "arbitrary"),
            vmem_limit_bytes=vmem_limit),
        cost_estimate=cost,
    )(x2d, w12, b12, w3, b3)

    return out[:M, :O].reshape(B, S, O)


def reference(x, w1, b1, w2, b2, w3, b3):
    x1 = jnp.einsum("bsd,dh->bsh", x, w1) + b1.reshape(-1)
    x2 = jnp.einsum("bsd,dh->bsh", x, w2) + b2.reshape(-1)
    h = jax.nn.silu(x1) * x2
    return jnp.einsum("bsh,ho->bso", h, w3) + b3.reshape(-1)


if __name__ == "__main__":
    # Small shapes consistent with the module: embed_dim=32 -> hidden=128.
    batch, seq, embed_dim, num_classes = 2, 8, 32, 8
    hidden = 4 * embed_dim

    key = jax.random.PRNGKey(0)
    kx, k1, k2, k3, kb1, kb2, kb3 = jax.random.split(key, 7)

    x = jax.random.normal(kx, (batch, seq, embed_dim), dtype=jnp.float32)

    # Parameters stored transposed as (in_features, out_features).
    w1 = jax.random.normal(k1, (embed_dim, hidden), jnp.float32) / jnp.sqrt(embed_dim)
    w2 = jax.random.normal(k2, (embed_dim, hidden), jnp.float32) / jnp.sqrt(embed_dim)
    w3 = jax.random.normal(k3, (hidden, num_classes), jnp.float32) / jnp.sqrt(hidden)
    b1 = jax.random.normal(kb1, (1, hidden), jnp.float32) * 0.01
    b2 = jax.random.normal(kb2, (1, hidden), jnp.float32) * 0.01
    b3 = jax.random.normal(kb3, (1, num_classes), jnp.float32) * 0.01

    y_ref = reference(x, w1, b1, w2, b2, w3, b3)

    # f32 path: exact parity with the PyTorch reference numerics.
    fn_f32 = jax.jit(functools.partial(swiglu_mlp, tm=256, th=512))
    y = fn_f32(x, w1, b1, w2, b2, w3, b3)
    jax.block_until_ready(y)
    assert y.shape == (batch, seq, num_classes)
    assert jnp.allclose(y, y_ref, atol=1e-5, rtol=1e-5)

    # bf16 MXU-operand path (f32 accumulation / SiLU): the recommended
    # high-throughput configuration on v6e / v7x.
    fn_bf16 = jax.jit(functools.partial(swiglu_mlp, tm=256, th=512,
                                        compute_dtype=jnp.bfloat16))
    y_bf16 = fn_bf16(x, w1, b1, w2, b2, w3, b3)
    jax.block_until_ready(y_bf16)
    assert y_bf16.shape == (batch, seq, num_classes)
    assert jnp.allclose(y_bf16.astype(jnp.float32), y_ref, atol=1e-1, rtol=1e-1)

    print("KERNEL_OK")
</pallas_src>

<mosaic_0001>
module attributes {stable_mosaic.version = 11 : i64} {
  func.func @_swiglu_kernel(%arg0: i32, %arg1: i32, %arg2: memref<8x32xf32, #tpu.memory_space<vmem>>, %arg3: memref<32x256xf32, #tpu.memory_space<vmem>>, %arg4: memref<1x256xf32, #tpu.memory_space<vmem>>, %arg5: memref<128x128xf32, #tpu.memory_space<vmem>>, %arg6: memref<1x128xf32, #tpu.memory_space<vmem>>, %arg7: memref<8x128xf32, #tpu.memory_space<vmem>>, %arg8: memref<8x128xf32, #tpu.memory_space<vmem>>) attributes {dimension_semantics = [#tpu.dimension_semantics<parallel>, #tpu.dimension_semantics<arbitrary>], iteration_bounds = array<i64: 2, 1>, scalar_prefetch = 0 : i64, scratch_operands = 1 : i64, tpu.core_type = #tpu.core_type<tc>, window_params = [{transform_indices = @transform_0, window_bounds = array<i64: 8, 32>}, {transform_indices = @transform_1, window_bounds = array<i64: 32, 256>}, {transform_indices = @transform_2, window_bounds = array<i64: 1, 256>}, {transform_indices = @transform_3, window_bounds = array<i64: 128, 128>}, {pipeline_mode = #tpu.pipeline_mode<synchronous>, transform_indices = @transform_4, window_bounds = array<i64: 1, 128>}, {transform_indices = @transform_5, window_bounds = array<i64: 8, 128>}]} {
    %c0_i32 = arith.constant 0 : i32
    %0 = arith.cmpi eq, %arg1, %c0_i32 : i32
    %1 = arith.extui %0 : i1 to i32
    %c0_i32_0 = arith.constant 0 : i32
    %2 = arith.cmpi ne, %1, %c0_i32_0 : i32
    scf.if %2 {
      %c0_16 = arith.constant 0 : index
      %c0_17 = arith.constant 0 : index
      %26 = vector.load %arg6[%c0_16, %c0_17] : memref<1x128xf32, #tpu.memory_space<vmem>>, vector<1x128xf32>
      %27 = vector.shape_cast %26 : vector<1x128xf32> to vector<1x128xf32>
      %28 = vector.broadcast %27 : vector<1x128xf32> to vector<8x128xf32>
      %c0_18 = arith.constant 0 : index
      %c0_19 = arith.constant 0 : index
      %29 = vector.load %arg8[%c0_18, %c0_19] : memref<8x128xf32, #tpu.memory_space<vmem>>, vector<8x128xf32>
      tpu.vector_store %arg8[%c0_18, %c0_19], %28 {strides = array<i32>} : memref<8x128xf32, #tpu.memory_space<vmem>>, vector<8x128xf32>,
    } else {
    }
    %c0 = arith.constant 0 : index
    %c0_1 = arith.constant 0 : index
    %3 = vector.load %arg2[%c0, %c0_1] : memref<8x32xf32, #tpu.memory_space<vmem>>, vector<8x32xf32>
    %c0_2 = arith.constant 0 : index
    %c0_3 = arith.constant 0 : index
    %4 = vector.load %arg3[%c0_2, %c0_3] : memref<32x256xf32, #tpu.memory_space<vmem>>, vector<32x256xf32>
    %cst = arith.constant dense<0.000000e+00> : vector<8x256xf32>
    %5 = tpu.matmul %3, %4, %cst {dimension_numbers = #tpu.dot_dimension_numbers<[1], [0], [0], [1], [0, 0, 1, 1], [], []>} : vector<8x32xf32>, vector<32x256xf32>, vector<8x256xf32> -> vector<8x256xf32>
    %c0_4 = arith.constant 0 : index
    %c0_5 = arith.constant 0 : index
    %6 = vector.load %arg4[%c0_4, %c0_5] : memref<1x256xf32, #tpu.memory_space<vmem>>, vector<1x256xf32>
    %7 = vector.broadcast %6 : vector<1x256xf32> to vector<8x256xf32>
    %8 = arith.addf %5, %7 : vector<8x256xf32>
    %9 = vector.extract_strided_slice %8 {offsets = [0, 0], sizes = [8, 128], strides = [1, 1]} : vector<8x256xf32> to vector<8x128xf32>
    %10 = vector.extract_strided_slice %8 {offsets = [0, 128], sizes = [8, 128], strides = [1, 1]} : vector<8x256xf32> to vector<8x128xf32>
    %11 = arith.negf %9 : vector<8x128xf32>
    %12 = math.exp %11 : vector<8x128xf32>
    %cst_6 = arith.constant 1.000000e+00 : f32
    %13 = vector.broadcast %cst_6 : f32 to vector<8x128xf32>
    %14 = arith.addf %13, %12 : vector<8x128xf32>
    %15 = arith.divf %13, %14 : vector<8x128xf32>
    %16 = arith.mulf %9, %15 : vector<8x128xf32>
    %17 = arith.mulf %16, %10 : vector<8x128xf32>
    %c0_7 = arith.constant 0 : index
    %c0_8 = arith.constant 0 : index
    %18 = vector.load %arg8[%c0_7, %c0_8] : memref<8x128xf32, #tpu.memory_space<vmem>>, vector<8x128xf32>
    %c0_9 = arith.constant 0 : index
    %c0_10 = arith.constant 0 : index
    %19 = vector.load %arg5[%c0_9, %c0_10] : memref<128x128xf32, #tpu.memory_space<vmem>>, vector<128x128xf32>
    %cst_11 = arith.constant dense<0.000000e+00> : vector<8x128xf32>
    %20 = tpu.matmul %17, %19, %cst_11 {dimension_numbers = #tpu.dot_dimension_numbers<[1], [0], [0], [1], [0, 0, 1, 1], [], []>} : vector<8x128xf32>, vector<128x128xf32>, vector<8x128xf32> -> vector<8x128xf32>
    %21 = arith.addf %18, %20 : vector<8x128xf32>
    %c0_12 = arith.constant 0 : index
    %c0_13 = arith.constant 0 : index
    %22 = vector.load %arg8[%c0_12, %c0_13] : memref<8x128xf32, #tpu.memory_space<vmem>>, vector<8x128xf32>
    tpu.vector_store %arg8[%c0_12, %c0_13], %21 {strides = array<i32>} : memref<8x128xf32, #tpu.memory_space<vmem>>, vector<8x128xf32>,
    %c0_i32_14 = arith.constant 0 : i32
    %23 = arith.cmpi eq, %arg1, %c0_i32_14 : i32
    %24 = arith.extui %23 : i1 to i32
    %c0_i32_15 = arith.constant 0 : i32
    %25 = arith.cmpi ne, %24, %c0_i32_15 : i32
    scf.if %25 {
      %c0_16 = arith.constant 0 : index
      %c0_17 = arith.constant 0 : index
      %26 = vector.load %arg8[%c0_16, %c0_17] : memref<8x128xf32, #tpu.memory_space<vmem>>, vector<8x128xf32>
      %c0_18 = arith.constant 0 : index
      %c0_19 = arith.constant 0 : index
      %27 = vector.load %arg7[%c0_18, %c0_19] : memref<8x128xf32, #tpu.memory_space<vmem>>, vector<8x128xf32>
      tpu.vector_store %arg7[%c0_18, %c0_19], %26 {strides = array<i32>} : memref<8x128xf32, #tpu.memory_space<vmem>>, vector<8x128xf32>,
    } else {
    }
    return
  }
  func.func @transform_0(%arg0: i32, %arg1: i32) -> (i32, i32) {
    %c0_i32 = arith.constant 0 : i32
    %c0_i32_0 = arith.constant 0 : i32
    return %arg0, %c0_i32 : i32, i32
  }
  func.func @transform_1(%arg0: i32, %arg1: i32) -> (i32, i32) {
    %c0_i32 = arith.constant 0 : i32
    %c0_i32_0 = arith.constant 0 : i32
    return %c0_i32, %arg1 : i32, i32
  }
  func.func @transform_2(%arg0: i32, %arg1: i32) -> (i32, i32) {
    %c0_i32 = arith.constant 0 : i32
    %c0_i32_0 = arith.constant 0 : i32
    return %c0_i32, %arg1 : i32, i32
  }
  func.func @transform_3(%arg0: i32, %arg1: i32) -> (i32, i32) {
    %c0_i32 = arith.constant 0 : i32
    %c0_i32_0 = arith.constant 0 : i32
    return %arg1, %c0_i32 : i32, i32
  }
  func.func @transform_4(%arg0: i32, %arg1: i32) -> (i32, i32) {
    %c0_i32 = arith.constant 0 : i32
    %c0_i32_0 = arith.constant 0 : i32
    %c0_i32_1 = arith.constant 0 : i32
    return %c0_i32, %c0_i32_0 : i32, i32
  }
  func.func @transform_5(%arg0: i32, %arg1: i32) -> (i32, i32) {
    %c0_i32 = arith.constant 0 : i32
    %c0_i32_0 = arith.constant 0 : i32
    return %arg0, %c0_i32 : i32, i32
  }
}

</mosaic_0001>

<bundles_post_ra>
// kernel: swiglu_mlp.1
= control target key start
LH: loop header
LB: loop body
LE: loop exit
PB: predicated region body
PF: predicated region fallthrough
CT: control target
= control target key end

     0   :  { %s630_s18 = smov 0   ;;  %s632_s19 = smov 0   ;;  %s748_s0 = inlined_call_operand.vmem [shape: f32[16,32], index: 0, kind: input, shape index: {}]   ;;  %s749_s1 = inlined_call_operand.vmem [shape: f32[32,256], index: 1, kind: input, shape index: {}]   ;;  %s750_s2 = inlined_call_operand.vmem [shape: f32[1,256], index: 2, kind: input, shape index: {}]   ;;  %s751_s3 = inlined_call_operand.vmem [shape: f32[128,128], index: 3, kind: input, shape index: {}]   ;;  %s752_s4 = inlined_call_operand.vmem [shape: f32[1,128], index: 4, kind: input, shape index: {}]   ;;  %s753_s5 = inlined_call_operand.vmem [shape: f32[16,128], index: 5, kind: output, shape index: {}]  }
   0x1   :  { %s634_s20 = smov 0  }
   0x2 LB: > { %s27_s21 = sadd.s32 1, %s594_s19  ;;  %p539_p0 = scmp.ge.s32.totalorder %s598_s20, 1  ;;  %s598_s20 = sphi %s634_s20, %s15_s20   ;;  %s594_s19 = sphi %s632_s19, %s755_s19   ;;  %s590_s18 = sphi %s630_s18, %s754_s18  }
   0x3   : > { %p29_p1 = scmp.ge.s32.totalorder %s27_s21, 2  ;;  %p230_p2 = scmp.lt.s32.totalorder %s598_s20, 3 }
   0x5   : > { %s757_s21 = smov (%p29_p1, %s27_s21), 0  ;;  %p231_p3 = pnand %p539_p0, %p230_p2 }
   0x6   : > { %p270_p4 = scmp.lt.s32.totalorder (!%p231_p3), %s590_s18, 1 }
   0x7   : > { %234 = sbr.rel (%p231_p3) target bundleno = 315 (0x13b), region = 40 }
   0xc   : > { %v311_v0 = vld [vmem:[%s749_s1 + $0x30] sm:$0xff]  ;;  %v309_v1 = vld [vmem:[%s749_s1 + $0x20] sm:$0xff]  ;;  %v312_v2 = vld [vmem:[%s749_s1 + $0x38] sm:$0xff]  ;;  %s759_s18 = smov (!%p270_p4, %s590_s18), 1  ;;  %vm319_vm0 = vcmask 261120  }
   0xd   : > { %335 = vmatpush.msra.mxu0 %v311_v0  ;;  %v310_v3 = vld [vmem:[%s749_s1 + $0x28] sm:$0xff]  ;;  %v307_v4 = vld [vmem:[%s749_s1 + $0x10] sm:$0xff]  ;;  %355 = vmatpush.msra.mxu1 %v312_v2  ;;  %v308_v5 = vld [vmem:[%s749_s1 + $0x18] sm:$0xff]  ;;  %s540_s11 = sshll.u32 %s759_s18, 3 }
   0xe   : > { %v305_v6 = vld [vmem:[%s749_s1] sm:$0xff]  ;;  %s273_s14 = scalar_lea.vmem %s748_s0, %s540_s11  ;;  %v306_v7 = vld [vmem:[%s749_s1 + $0x8] sm:$0xff]  ;;  %v400_v9 = vld [vmem:[%s751_s3 + $0x78] sm:$0xff]  ;;  %s294_s15 = scalar_lea.vmem %s753_s5, %s540_s11 }
   0xf   : > { %336 = vmatpush.msra.mxu0 %v309_v1  ;;  %356 = vmatpush.msra.mxu1 %v310_v3  ;;  %v304_v8 = vld [vmem:[%s273_s14] sm:$0xff]  ;;  %v399_v10 = vld [vmem:[%s751_s3 + $0x70] sm:$0xff]  ;;  %v398_v11 = vld [vmem:[%s751_s3 + $0x68] sm:$0xff] }
  0x10   : > { %401 = vmatpush.msra.mxu2 %v400_v9  ;;  %v397_v12 = vld [vmem:[%s751_s3 + $0x60] sm:$0xff]  ;;  %v396_v13 = vld [vmem:[%s751_s3 + $0x58] sm:$0xff]  ;;  %v395_v14 = vld [vmem:[%s751_s3 + $0x50] sm:$0xff] }
  0x11   : > { %337 = vmatpush.msra.mxu0 %v307_v4  ;;  %357 = vmatpush.msra.mxu1 %v308_v5  ;;  %v394_v15 = vld [vmem:[%s751_s3 + $0x48] sm:$0xff]  ;;  %v393_v16 = vld [vmem:[%s751_s3 + $0x40] sm:$0xff]  ;;  %v392_v17 = vld [vmem:[%s751_s3 + $0x38] sm:$0xff] }
  0x12   : > { %402 = vmatpush.msra.mxu2 %v399_v10  ;;  %v391_v18 = vld [vmem:[%s751_s3 + $0x30] sm:$0xff]  ;;  %v390_v19 = vld [vmem:[%s751_s3 + $0x28] sm:$0xff]  ;;  %v389_v20 = vld [vmem:[%s751_s3 + $0x20] sm:$0xff] }
  0x13   : > { %338 = vmatpush.msra.mxu0 %v305_v6  ;;  %358 = vmatpush.msra.mxu1 %v306_v7  ;;  %v313_v21 = vld [vmem:[%s750_s2] sm:$0x3]  ;;  %v388_v22 = vld [vmem:[%s751_s3 + $0x18] sm:$0xff]  ;;  %v387_v24 = vld [vmem:[%s751_s3 + $0x10] sm:$0xff] }
  0x14   : > { %542 = vmatmul.msk.f32.vlgmr.msra.gmra.mxu0 %vm319_vm0, %v304_v8  ;;  %543 = vmatmul.msk.f32.vlgmr.msra.gmra.mxu1 %vm319_vm0, %v304_v8  ;;  %v315_v23 = vperm.slane %v313_v21, 0  ;;  %v386_v25 = vld [vmem:[%s751_s3 + $0x8] sm:$0xff]  ;;  %v385_v26 = vld [vmem:[%s751_s3] sm:$0xff]  ;;  %v316_v38 = vperm.slane %v313_v21, 1 }
  0x15   : > { %403 = vmatpush.msra.mxu2 %v398_v11  ;;  %v571_v47 = vld [vmem:[%s752_s4] ss:$0 sm:$0xff] }
  0x17   : > { %404 = vmatpush.msra.mxu2 %v397_v12 }
  0x19   : > { %405 = vmatpush.msra.mxu2 %v396_v13 }
  0x1b   : > { %406 = vmatpush.msra.mxu2 %v395_v14 }
  0x1d   : > { %407 = vmatpush.msra.mxu2 %v394_v15 }
  0x1f   : > { %408 = vmatpush.msra.mxu2 %v393_v16 }
  0x21   : > { %409 = vmatpush.msra.mxu2 %v392_v17 }
  0x23   : > { %410 = vmatpush.msra.mxu2 %v391_v18 }
  0x25   : > { %411 = vmatpush.msra.mxu2 %v390_v19 }
  0x27   : > { %412 = vmatpush.msra.mxu2 %v389_v20 }
  0x29   : > { %413 = vmatpush.msra.mxu2 %v388_v22 }
  0x2b   : > { %414 = vmatpush.msra.mxu2 %v387_v24 }
  0x2d   : > { %415 = vmatpush.msra.mxu2 %v386_v25 }
  0x2f   : > { %416 = vmatpush.msra.mxu2 %v385_v26 }
  0x91   : > { %v340_v27 = vpop.f32.mrf.mxu0  ;;  %v360_v39 = vpop.f32.mrf.mxu1 }
  0x92   : > { %v341_v28 = vadd.f32 %v340_v27, %v315_v23  ;;  %v361_v43 = vadd.f32 %v360_v39, %v316_v38 }
  0x94   : > { %v544_v29 = vmul.f32 -1.442695, %v341_v28 }
  0x96   : > { %572 = vpow2.f32 %v544_v29 }
  0x9c   : > { %v573_v30 = vpop.eup %572 }
  0x9d   : > { %v366_v31 = vadd.f32 1.0, %v573_v30 }
  0x9f   : > { %574 = vrcp.f32 %v366_v31  ;;  %v378_v35 = vand.u32 2147483648, %v366_v31  ;;  %v376_v37 = vand.u32 2147483647, %v366_v31  ;;  %vm372_vm2 = vweird.f32 %v366_v31 }
  0xa1   : > { %v379_v41 = vor.u32 1.1754944e-38, %v378_v35  ;;  %vm377_vm4 = vcmp.eq.f32.partialorder %v376_v37, 8.507059e+37 }
  0xa5   : > { %v575_v32 = vpop.eup %574 }
  0xa6   : > { %v368_v33 = vmul.f32 %v575_v32, %v366_v31  ;;  %vm373_vm1 = vweird.f32 %v575_v32 }
  0xa7   : > { %vm374_vm3 = vmor %vm372_vm2, %vm373_vm1 }
  0xa8   : > { %v369_v34 = vsub.f32 1.0, %v368_v33 }
  0xaa   : > { %v370_v36 = vmul.f32 %v575_v32, %v369_v34 }
  0xac   : > { %v371_v40 = vadd.f32 %v575_v32, %v370_v36 }
  0xae   : > { %v375_v42 = vsel %vm374_vm3, %v575_v32, %v371_v40 }
  0xaf   : > { %v380_v44 = vsel %vm377_vm4, %v379_v41, %v375_v42 }
  0xb0   : > { %v382_v45 = vmul.f32 %v380_v44, %v341_v28 }
  0xb2   : > { %v383_v46 = vmul.f32 %v382_v45, %v361_v43 }
  0xb4   : > { %417 = vmatmul.f32.vlgmr.msra.gmra.mxu2 %v383_v46 }
 0x137   : > { %v418_v48 = vpop.f32.mrf.mxu2 }
 0x138   : > { %v421_v49 = vadd.f32 %v571_v47, %v418_v48 }
 0x13a   : > { %427 = vst [vmem:[%s294_s15] sm:$0xff] %v421_v49 }
 0x13b PF: > { %s15_s20 = sadd.s32 1, %s598_s20   ;;  %s754_s18 = smov %s594_s19 }
 0x13c   : > { %p12_p5 = scmp.ge.s32.totalorder %s15_s20, 4   ;;  %s755_s19 = smov %s757_s21 }
 0x13e   :  { %14 = sbr.rel (!%p12_p5) target bundleno = 2 (0x2), region = 87 }

</bundles_post_ra>
